<compile_context>
chip_gen: v7x
topology: tpu7x:2x2x1
jax: 0.10.0
libtpu: 0.0.40
codegen_flags: <defaults>
</compile_context>

<pallas_src>
import functools

import jax
import jax.numpy as jnp
from jax.experimental import pallas as pl
from jax.experimental.pallas import tpu as pltpu

_NEG_BIG = jnp.float32(-1e30)   # kills padded softmax lanes (exp underflows to 0)


def _round_up(n, m):
    return (n + m - 1) // m * m


def highway_mlp_kernel(x_ref, w_ref, b_ref, o_ref, *, d_pad):
    x = x_ref[...]                                   # (TB, Dp), input dtype

    # Fused matmul for both branches: (TB, 2*Dp), f32 accumulate on the MXU.
    h = jnp.dot(x, w_ref[...], preferred_element_type=jnp.float32) + b_ref[...]

    normal = jnp.maximum(h[:, :d_pad], 0.0)          # ReLU branch (Dp-aligned slice)
    g = h[:, d_pad:]                                 # gate logits (padded lanes ~ -1e30)

    # softmax over the feature axis (torch dim=1 for 2-D input)
    g = g - jnp.max(g, axis=-1, keepdims=True)
    e = jnp.exp(g)
    gate = e * pl.reciprocal(jnp.sum(e, axis=-1, keepdims=True), approx=True)

    xf = x.astype(jnp.float32)
    o_ref[...] = (xf + gate * (normal - xf)).astype(o_ref.dtype)


def prepare_highway_params(wn, bn, wg, bg, dtype=None):
    """One-time parameter prep (outside the hot path): transpose, fuse, pad."""
    D = wn.shape[0]
    Dp = _round_up(max(D, 128), 128)                 # lane-dense feature dim
    dtype = dtype or wn.dtype

    wn_p = jnp.zeros((Dp, Dp), dtype).at[:D, :D].set(wn.T.astype(dtype))
    wg_p = jnp.zeros((Dp, Dp), dtype).at[:D, :D].set(wg.T.astype(dtype))
    w_cat = jnp.concatenate([wn_p, wg_p], axis=1)    # (Dp, 2*Dp)

    # Fused bias. Padded gate lanes get a huge negative bias so softmax drops
    # them without any in-kernel masking; padded normal lanes stay 0.
    b_cat = jnp.zeros((1, 2 * Dp), jnp.float32)
    b_cat = b_cat.at[0, :D].set(bn.astype(jnp.float32))
    b_cat = b_cat.at[0, Dp + D:].set(_NEG_BIG)
    b_cat = b_cat.at[0, Dp:Dp + D].set(bg.astype(jnp.float32))
    return w_cat, b_cat, D, Dp


def highway_mlp(x, w_cat, b_cat, d_valid, d_pad, *, tb_max=256):
    """x: (B, D); w_cat/b_cat/d_valid/d_pad from prepare_highway_params."""
    B, D = x.shape
    assert D == d_valid

    # Batch tile: sublane-aligned (multiple of 8), up to tb_max rows.
    TB = min(tb_max, _round_up(B, 8))
    B_pad = _round_up(B, TB)

    # Pad x once (glue): zero rows/cols are inert and sliced off the output.
    xp = x
    if (B_pad, d_pad) != (B, D):
        xp = jnp.zeros((B_pad, d_pad), x.dtype).at[:B, :D].set(x)

    grid = (B_pad // TB,)

    # VMEM budget: resident weights + double-buffered x/out tiles + f32
    # intermediates + headroom. Capped at 64 MiB (v7x physical VMEM per TC).
    need = (w_cat.size * w_cat.dtype.itemsize
            + b_cat.size * 4
            + 4 * TB * d_pad * xp.dtype.itemsize     # 2x-buffered in + out tiles
            + 8 * TB * d_pad * 4                     # f32 intermediates
            + (4 << 20))
    vmem_limit = int(min(max(need, 32 << 20), 64 << 20))

    kernel = functools.partial(highway_mlp_kernel, d_pad=d_pad)

    out = pl.pallas_call(
        kernel,
        out_shape=jax.ShapeDtypeStruct((B_pad, d_pad), x.dtype),
        grid=grid,
        in_specs=[
            pl.BlockSpec((TB, d_pad), lambda i: (i, 0)),          # x: tiled rows
            pl.BlockSpec((d_pad, 2 * d_pad), lambda i: (0, 0)),   # weights resident
            pl.BlockSpec((1, 2 * d_pad), lambda i: (0, 0)),       # biases resident
        ],
        out_specs=pl.BlockSpec((TB, d_pad), lambda i: (i, 0)),
        compiler_params=pltpu.CompilerParams(
            dimension_semantics=("parallel",),       # megacore split on v7x
            vmem_limit_bytes=vmem_limit,
        ),
    )(xp, w_cat, b_cat)

    return out[:B, :D]


def highway_mlp_ref(x, wn, bn, wg, bg):
    normal = jax.nn.relu(x @ wn.T + bn)
    gate = jax.nn.softmax(x @ wg.T + bg, axis=1)
    return normal * gate + (1.0 - gate) * x


if __name__ == "__main__":
    B, D = 8, 32  # small shapes consistent with HighwayMLP(input_size=D)
    key = jax.random.PRNGKey(0)
    kx, kwn, kbn, kwg = jax.random.split(key, 4)

    x = jax.random.normal(kx, (B, D), dtype=jnp.float32)
    # Deterministic parameter init (synthetic; mimics nn.Linear shapes).
    wn = jax.random.normal(kwn, (D, D), dtype=jnp.float32) * 0.1
    bn = jax.random.normal(kbn, (D,), dtype=jnp.float32) * 0.1
    wg = jax.random.normal(kwg, (D, D), dtype=jnp.float32) * 0.1
    bg = jnp.full((D,), -2.0, dtype=jnp.float32)  # gate_bias = -2

    # One-time parameter prep (transpose + fuse + pad), outside the per-call path.
    w_cat, b_cat, d_valid, d_pad = prepare_highway_params(wn, bn, wg, bg)

    out = highway_mlp(x, w_cat, b_cat, d_valid, d_pad)
    out = jax.block_until_ready(out)

    ref = highway_mlp_ref(x, wn, bn, wg, bg)
    assert out.shape == (B, D) and out.dtype == jnp.float32
    assert jnp.allclose(out, ref, atol=2e-3, rtol=2e-3), "mismatch vs reference"

    print("KERNEL_OK")
</pallas_src>

<mosaic_0001>
module attributes {stable_mosaic.version = 11 : i64} {
  func.func @highway_mlp_kernel(%arg0: i32, %arg1: memref<8x128xf32, #tpu.memory_space<vmem>>, %arg2: memref<128x256xf32, #tpu.memory_space<vmem>>, %arg3: memref<1x256xf32, #tpu.memory_space<vmem>>, %arg4: memref<8x128xf32, #tpu.memory_space<vmem>>) attributes {dimension_semantics = [#tpu.dimension_semantics<parallel>], iteration_bounds = array<i64: 1>, scalar_prefetch = 0 : i64, scratch_operands = 0 : i64, tpu.core_type = #tpu.core_type<tc>, window_params = [{transform_indices = @transform_0, window_bounds = array<i64: 8, 128>}, {pipeline_mode = #tpu.pipeline_mode<synchronous>, transform_indices = @transform_1, window_bounds = array<i64: 128, 256>}, {pipeline_mode = #tpu.pipeline_mode<synchronous>, transform_indices = @transform_2, window_bounds = array<i64: 1, 256>}, {transform_indices = @transform_3, window_bounds = array<i64: 8, 128>}]} {
    %c0 = arith.constant 0 : index
    %c0_0 = arith.constant 0 : index
    %0 = vector.load %arg1[%c0, %c0_0] : memref<8x128xf32, #tpu.memory_space<vmem>>, vector<8x128xf32>
    %c0_1 = arith.constant 0 : index
    %c0_2 = arith.constant 0 : index
    %1 = vector.load %arg2[%c0_1, %c0_2] : memref<128x256xf32, #tpu.memory_space<vmem>>, vector<128x256xf32>
    %cst = arith.constant dense<0.000000e+00> : vector<8x256xf32>
    %2 = tpu.matmul %0, %1, %cst {dimension_numbers = #tpu.dot_dimension_numbers<[1], [0], [0], [1], [0, 0, 1, 1], [], []>} : vector<8x128xf32>, vector<128x256xf32>, vector<8x256xf32> -> vector<8x256xf32>
    %c0_3 = arith.constant 0 : index
    %c0_4 = arith.constant 0 : index
    %3 = vector.load %arg3[%c0_3, %c0_4] : memref<1x256xf32, #tpu.memory_space<vmem>>, vector<1x256xf32>
    %4 = vector.broadcast %3 : vector<1x256xf32> to vector<8x256xf32>
    %5 = arith.addf %2, %4 : vector<8x256xf32>
    %6 = vector.extract_strided_slice %5 {offsets = [0, 0], sizes = [8, 128], strides = [1, 1]} : vector<8x256xf32> to vector<8x128xf32>
    %cst_5 = arith.constant 0.000000e+00 : f32
    %7 = vector.broadcast %cst_5 : f32 to vector<8x128xf32>
    %8 = arith.maximumf %6, %7 : vector<8x128xf32>
    %9 = vector.extract_strided_slice %5 {offsets = [0, 128], sizes = [8, 128], strides = [1, 1]} : vector<8x256xf32> to vector<8x128xf32>
    %cst_6 = arith.constant dense<0xFF800000> : vector<8xf32>
    %10 = vector.multi_reduction <maximumf>, %9, %cst_6 [1] : vector<8x128xf32> to vector<8xf32>
    %11 = vector.shape_cast %10 : vector<8xf32> to vector<8x1xf32>
    %12 = vector.broadcast %11 : vector<8x1xf32> to vector<8x128xf32>
    %13 = arith.subf %9, %12 : vector<8x128xf32>
    %14 = math.exp %13 : vector<8x128xf32>
    %cst_7 = arith.constant dense<0.000000e+00> : vector<8xf32>
    %15 = vector.multi_reduction <add>, %14, %cst_7 [1] : vector<8x128xf32> to vector<8xf32>
    %16 = vector.shape_cast %15 : vector<8xf32> to vector<8x1xf32>
    %17 = tpu.reciprocal %16 {approx = true} : vector<8x1xf32> -> vector<8x1xf32>
    %18 = vector.broadcast %17 : vector<8x1xf32> to vector<8x128xf32>
    %19 = arith.mulf %14, %18 : vector<8x128xf32>
    %20 = arith.subf %8, %0 : vector<8x128xf32>
    %21 = arith.mulf %19, %20 : vector<8x128xf32>
    %22 = arith.addf %0, %21 : vector<8x128xf32>
    %c0_8 = arith.constant 0 : index
    %c0_9 = arith.constant 0 : index
    %23 = vector.load %arg4[%c0_8, %c0_9] : memref<8x128xf32, #tpu.memory_space<vmem>>, vector<8x128xf32>
    tpu.vector_store %arg4[%c0_8, %c0_9], %22 {strides = array<i32>} : memref<8x128xf32, #tpu.memory_space<vmem>>, vector<8x128xf32>,
    return
  }
  func.func @transform_0(%arg0: i32) -> (i32, i32) {
    %c0_i32 = arith.constant 0 : i32
    %c0_i32_0 = arith.constant 0 : i32
    return %arg0, %c0_i32 : i32, i32
  }
  func.func @transform_1(%arg0: i32) -> (i32, i32) {
    %c0_i32 = arith.constant 0 : i32
    %c0_i32_0 = arith.constant 0 : i32
    %c0_i32_1 = arith.constant 0 : i32
    return %c0_i32, %c0_i32_0 : i32, i32
  }
  func.func @transform_2(%arg0: i32) -> (i32, i32) {
    %c0_i32 = arith.constant 0 : i32
    %c0_i32_0 = arith.constant 0 : i32
    %c0_i32_1 = arith.constant 0 : i32
    return %c0_i32, %c0_i32_0 : i32, i32
  }
  func.func @transform_3(%arg0: i32) -> (i32, i32) {
    %c0_i32 = arith.constant 0 : i32
    %c0_i32_0 = arith.constant 0 : i32
    return %arg0, %c0_i32 : i32, i32
  }
}

</mosaic_0001>

<bundles_post_ra>
// kernel: tpu_custom_call.1
= control target key start
LH: loop header
LB: loop body
LE: loop exit
PB: predicated region body
PF: predicated region fallthrough
CT: control target
= control target key end

     0   :  { %8 = vsyncpa [#allocation3], 0  ;;  %s373_s0 = inlined_call_operand.hbm [shape: f32[8,128], index: 0, kind: input, shape index: {}]   ;;  %s374_s1 = inlined_call_operand.hbm [shape: f32[128,256], index: 1, kind: input, shape index: {}]   ;;  %s375_s2 = inlined_call_operand.vmem [shape: f32[1,256], index: 2, kind: input, shape index: {}]   ;;  %s376_s3 = inlined_call_operand.hbm [shape: f32[8,128], index: 3, kind: output, shape index: {}]  }
   0x1   :  { %9 = vsyncpa [#allocation6], 0 }
   0x2   :  { %10 = vsyncpa [#allocation4], 0  ;;  %s301_s12 = smov [#allocation2]   ;;  %s302_s14 = smov [#allocation5]  }
   0x3   :  { %s17_s13 = sshll.u32 %s301_s12, 4  ;;  %s26_s15 = sshll.u32 %s302_s14, 4  ;;  %s18_s13 = int_to_ptr.vmem [resolvable:$true] %s17_s13  ;;  %s327_s15 = int_to_ptr.vmem [resolvable:$true] %s26_s15 }
   0x4   :  { %s229_s18 = scalar_lea.hbm %s373_s0, 128 }
   0x5   :  { %p230_p0 = scmp.ne.s32.totalorder %s373_s0, %s229_s18  ;;  %p233_p1 = scmp.lt.u32.totalorder %s229_s18, %s373_s0 }
   0x7   :  { %p235_p2 = pnand %p233_p1, %p230_p0 }
   0x9   :  { %238 = shalt.err (!%p235_p2)
}
   0xa   :  { %s239_s23 = scalar_lea.vmem %s18_s13, 128  ;;  %p244_p4 = scmp.lt.s32.totalorder %s18_s13, %s18_s13 }
   0xb   :  { %p240_p3 = scmp.ne.s32.totalorder %s18_s13, %s239_s23  ;;  %p245_p5 = scmp.lt.s32.totalorder %s239_s23, %s239_s23 }
   0xd   :  { %p246_p6 = por %p245_p5, %p244_p4 }
   0xf   :  { %p247_p7 = pnand %p246_p6, %p240_p3 }
  0x11   :  { %250 = shalt.err (!%p247_p7)
}
  0x12   :  { %20 = dma.hbm_to_vmem [thread:$0]  %s373_s0, 128, %s18_s13, [#allocation3]  }
  0x13   :  { %s251_s28 = scalar_lea.hbm %s374_s1, 4096 }
  0x14   :  { %p252_p8 = scmp.ne.s32.totalorder %s374_s1, %s251_s28  ;;  %p255_p9 = scmp.lt.u32.totalorder %s251_s28, %s374_s1 }
  0x16   :  { %p257_p10 = pnand %p255_p9, %p252_p8 }
  0x18   :  { %260 = shalt.err (!%p257_p10)
}
  0x19   :  { %s261_s6 = scalar_lea.vmem %s327_s15, 4096  ;;  %p266_p12 = scmp.lt.s32.totalorder %s327_s15, %s327_s15 }
  0x1a   :  { %p262_p11 = scmp.ne.s32.totalorder %s327_s15, %s261_s6  ;;  %p267_p13 = scmp.lt.s32.totalorder %s261_s6, %s261_s6 }
  0x1c   :  { %p268_p0 = por %p267_p13, %p266_p12 }
  0x1e   :  { %p269_p1 = pnand %p268_p0, %p262_p11 }
  0x20   :  { %272 = shalt.err (!%p269_p1)
}
  0x21   :  { %s303_s0 = smov 256   ;;  %s304_s7 = smov 16  }
  0x22   :  { %32 = dma.hbm_to_vmem [thread:$0]  %s374_s1, 4096, %s327_s15, [#allocation6], %s303_s0, %s303_s0, %s304_s7  }
  0x23   :  { %295 = dma.done.wait [#allocation3], 128  }
  0x24   :  { %296 = vsyncadd [#allocation3], 4294967168 }
  0x25   :  { %297 = dma.done.wait [#allocation6], 4096  }
  0x26   :  { %298 = vsyncadd [#allocation6], 4294963200  ;;  %v305_v0 = vmov 0.0   ;;  %v43_v1 = vld [vmem:[#allocation5 + $0x8] sm:$0xff]  ;;  %v45_v2 = vld [vmem:[#allocation5 + $0x18] sm:$0xff]  ;;  %v76_v50 = vlaneseq }
  0x27   :  { %150 = vmatprep.mubr.f32.mxu0 %v305_v0  ;;  %v42_v3 = vld [vmem:[#allocation5] sm:$0xff]  ;;  %v187_v4 = vpack.c.bf16 %v45_v2, %v43_v1  ;;  %v44_v5 = vld [vmem:[#allocation5 + $0x10] sm:$0xff]  ;;  %v47_v6 = vld [vmem:[#allocation5 + $0x28] sm:$0xff] }
  0x28   :  { %v49_v7 = vld [vmem:[#allocation5 + $0x38] sm:$0xff]  ;;  %v189_v8 = vpack.c.bf16 %v44_v5, %v42_v3  ;;  %v46_v10 = vld [vmem:[#allocation5 + $0x20] sm:$0xff]  ;;  %v48_v11 = vld [vmem:[#allocation5 + $0x30] sm:$0xff]  ;;  %v77_v51 = vshrl.u32 %v76_v50, 7 }
  0x29   :  { %v191_v9 = vpack.c.bf16 %v49_v7, %v47_v6  ;;  %v51_v12 = vld [vmem:[#allocation5 + $0x48] sm:$0xff]  ;;  %188 = vmatprep.subr.bf16.mxu0 %v187_v4  ;;  %v53_v13 = vld [vmem:[#allocation5 + $0x58] sm:$0xff]  ;;  %v193_v14 = vpack.c.bf16 %v48_v11, %v46_v10  ;;  %v50_v16 = vld [vmem:[#allocation5 + $0x40] sm:$0xff] }
  0x2a   :  { %190 = vmatpush1.bf16.msra.mxu0 %v189_v8  ;;  %v195_v15 = vpack.c.bf16 %v53_v13, %v51_v12  ;;  %v52_v17 = vld [vmem:[#allocation5 + $0x50] sm:$0xff]  ;;  %v55_v18 = vld [vmem:[#allocation5 + $0x68] sm:$0xff]  ;;  %v57_v19 = vld [vmem:[#allocation5 + $0x78] sm:$0xff]  ;;  %v82_v52 = vsub.s32 1, %v77_v51  ;;  %v78_v62 = vsub.s32 0, %v77_v51 }
  0x2b   :  { %192 = vmatprep.subr.bf16.mxu0 %v191_v9  ;;  %v197_v20 = vpack.c.bf16 %v52_v17, %v50_v16  ;;  %v199_v21 = vpack.c.bf16 %v57_v19, %v55_v18  ;;  %v54_v22 = vld [vmem:[#allocation5 + $0x60] sm:$0xff]  ;;  %v56_v23 = vld [vmem:[#allocation5 + $0x70] sm:$0xff]  ;;  %v59_v24 = vld [vmem:[#allocation5 + $0x88] sm:$0xff] }
  0x2c   :  { %v61_v25 = vld [vmem:[#allocation5 + $0x98] sm:$0xff]  ;;  %v201_v26 = vpack.c.bf16 %v56_v23, %v54_v22  ;;  %v58_v28 = vld [vmem:[#allocation5 + $0x80] sm:$0xff]  ;;  %v60_v29 = vld [vmem:[#allocation5 + $0x90] sm:$0xff] }
  0x2d   :  { %v203_v27 = vpack.c.bf16 %v61_v25, %v59_v24  ;;  %v63_v30 = vld [vmem:[#allocation5 + $0xa8] sm:$0xff]  ;;  %v65_v31 = vld [vmem:[#allocation5 + $0xb8] sm:$0xff]  ;;  %v205_v32 = vpack.c.bf16 %v60_v29, %v58_v28  ;;  %v62_v34 = vld [vmem:[#allocation5 + $0xa0] sm:$0xff] }
  0x2e   :  { %194 = vmatpush1.bf16.msra.mxu0 %v193_v14  ;;  %v207_v33 = vpack.c.bf16 %v65_v31, %v63_v30  ;;  %v64_v35 = vld [vmem:[#allocation5 + $0xb0] sm:$0xff]  ;;  %v67_v36 = vld [vmem:[#allocation5 + $0xc8] sm:$0xff]  ;;  %v69_v37 = vld [vmem:[#allocation5 + $0xd8] sm:$0xff] }
  0x2f   :  { %196 = vmatprep.subr.bf16.mxu0 %v195_v15  ;;  %v209_v38 = vpack.c.bf16 %v64_v35, %v62_v34  ;;  %v211_v39 = vpack.c.bf16 %v69_v37, %v67_v36  ;;  %v66_v40 = vld [vmem:[#allocation5 + $0xc0] sm:$0xff]  ;;  %v68_v41 = vld [vmem:[#allocation5 + $0xd0] sm:$0xff]  ;;  %v71_v42 = vld [vmem:[#allocation5 + $0xe8] sm:$0xff] }
  0x30   :  { %v73_v43 = vld [vmem:[#allocation5 + $0xf8] sm:$0xff]  ;;  %v213_v44 = vpack.c.bf16 %v68_v41, %v66_v40  ;;  %v70_v46 = vld [vmem:[#allocation5 + $0xe0] sm:$0xff]  ;;  %v72_v47 = vld [vmem:[#allocation5 + $0xf0] sm:$0xff] }
  0x31   :  { %v215_v45 = vpack.c.bf16 %v73_v43, %v71_v42  ;;  %v217_v48 = vpack.c.bf16 %v72_v47, %v70_v46  ;;  %v41_v49 = vld [vmem:[#allocation2] sm:$0xff] }
  0x32   :  { %198 = vmatpush1.bf16.msra.mxu0 %v197_v20  ;;  %v74_v53 = vld [vmem:[%s375_s2] sm:$0x3]  ;;  %s306_s2 = smov [#allocation7]  }
  0x33   :  { %200 = vmatprep.subr.bf16.mxu0 %v199_v21  ;;  %v83_v54 = vrot.slane %v74_v53, %v82_v52  ;;  %v79_v63 = vrot.slane %v74_v53, %v78_v62  ;;  %s177_s11 = sshll.u32 %s306_s2, 4  ;;  %s178_s11 = int_to_ptr.vmem [resolvable:$true] %s177_s11 }
  0x34   :  { %s273_s12 = scalar_lea.vmem %s178_s11, 128  ;;  %p278_p3 = scmp.lt.s32.totalorder %s178_s11, %s178_s11 }
  0x35   :  { %p274_p2 = scmp.ne.s32.totalorder %s178_s11, %s273_s12  ;;  %p279_p4 = scmp.lt.s32.totalorder %s273_s12, %s273_s12 }
  0x36   :  { %202 = vmatpush1.bf16.msra.mxu0 %v201_v26 }
  0x37   :  { %204 = vmatprep.subr.bf16.mxu0 %v203_v27  ;;  %p280_p5 = por %p279_p4, %p278_p3 }
  0x39   :  { %p281_p6 = pnand %p280_p5, %p274_p2 }
  0x3a   :  { %206 = vmatpush1.bf16.msra.mxu0 %v205_v32 }
  0x3b   :  { %208 = vmatprep.subr.bf16.mxu0 %v207_v33 }
  0x3e   :  { %210 = vmatpush1.bf16.msra.mxu0 %v209_v38 }
  0x3f   :  { %212 = vmatprep.subr.bf16.mxu0 %v211_v39 }
  0x42   :  { %214 = vmatpush1.bf16.msra.mxu0 %v213_v44 }
  0x43   :  { %216 = vmatprep.subr.bf16.mxu0 %v215_v45 }
  0x46   :  { %218 = vmatpush1.bf16.msra.mxu0 %v217_v48 }
  0x49   :  { %151 = vmatmul.mubr.f32.vlgmr.msra.gmra.mrb[0].mxu0 %v41_v49 }
 0x11c   :  { %v152_v55 = vpop.f32.mrb[0].mxu0 }
 0x11d   :  { %v154_v56 = vpop.f32.mrb[1].mxu0  ;;  %v153_v1 = vadd.f32 %v152_v55, %v79_v63 }
 0x11e   :  { %v155_v57 = vadd.f32 %v154_v56, %v83_v54 }
 0x11f   :  { %v157_v2 = vmax.f32 %v153_v1, 0.0 }
 0x120   :  { %158 = vmax.xlane.f32.xlu0 %v155_v57 }
 0x121   :  { %v167_v4 = vsub.f32 %v157_v2, %v41_v49 }
 0x1ad   :  { %v159_v58 = vpop.xlane.xlu0 %158 }
 0x1ae   :  { %v160_v59 = vsub.f32 %v155_v57, %v159_v58 }
 0x1b0   :  { %v161_v60 = vmul.f32 1.442695, %v160_v59 }
 0x1b2   :  { %225 = vpow2.f32 %v161_v60 }
 0x1bc   :  { %v226_v61 = vpop.eup %225 }
 0x1bd   :  { %163 = vadd.xlane.f32.xlu0 %v226_v61 }
 0x24a   :  { %v164_v0 = vpop.xlane.xlu0 %163 }
 0x24b   :  { %227 = vrcp.f32 %v164_v0 }
 0x255   :  { %v228_v3 = vpop.eup %227 }
 0x256   :  { %v166_v5 = vmul.f32 %v228_v3, %v226_v61 }
 0x258   :  { %v168_v6 = vmul.f32 %v167_v4, %v166_v5 }
 0x25a   :  { %v169_v7 = vadd.f32 %v168_v6, %v41_v49 }
 0x25c   :  { %170 = vst [vmem:[#allocation7] sm:$0xff] %v169_v7 }
 0x25d   :  { %284 = shalt.err (!%p281_p6)
}
 0x25e   :  { %s285_s15 = scalar_lea.hbm %s376_s3, 128 }
 0x25f   :  { %p286_p7 = scmp.ne.s32.totalorder %s376_s3, %s285_s15  ;;  %p289_p8 = scmp.lt.u32.totalorder %s285_s15, %s376_s3 }
 0x261   :  { %p291_p9 = pnand %p289_p8, %p286_p7 }
 0x263   :  { %294 = shalt.err (!%p291_p9)
}
 0x264   :  { %180 = dma.vmem_to_hbm [thread:$0]  %s178_s11, 128, %s376_s3, [#allocation4]  }
 0x265   :  { %299 = dma.done.wait [#allocation4], 128  }
 0x266   :  { %300 = vsyncadd [#allocation4], 4294967168 }
 0x267   :  { %184 = vsyncpa [#allocation3], 1 }
 0x268   :  { %185 = vsyncpa [#allocation6], 1 }
 0x269   :  { %186 = vsyncpa [#allocation4], 1 }

</bundles_post_ra>
